<compile_context>
chip_gen: v7x
topology: tpu7x:2x2x1
jax: 0.10.0
libtpu: 0.0.40
codegen_flags: <defaults>
</compile_context>

<pallas_src>
import functools
import math

import jax
import jax.numpy as jnp
from jax.experimental import pallas as pl
from jax.experimental.pallas import tpu as pltpu


def _ceil_div(a, b):
    return -(-a // b)


def _patch_embed_kernel(x_ref, w_ref, pos_ref, g_ref, mask_ref, o_ref, *, eps, inv_sqrt_d):
    # x_ref:    (TM, G*F)   TM packed rows; each holds G consecutive (bt, p) patch rows
    # w_ref:    (G*F, G*D)  block-diagonal Linear weight (bias already folded into pos)
    # pos_ref:  (TM, G*D)   pos_embed + bias, pre-tiled to the packed layout
    # g_ref:    (1, G*D)    RMSNorm weight tiled G times
    # mask_ref: (G*D, G*D)  block mask: 1 where two lanes belong to the same d_model segment
    # o_ref:    (TM, G*D)   lane-dense packed output (G*D == 128)
    h = jnp.dot(x_ref[...], w_ref[...], preferred_element_type=jnp.float32)  # MXU
    h = h + pos_ref[...]
    # Per-segment sum of squares, broadcast back to every lane of the segment, via MXU.
    ss = jnp.dot(h * h, mask_ref[...], preferred_element_type=jnp.float32)   # (TM, G*D)
    # norm = sqrt(sum(h^2)) * D^{-1/2};  out = h / (norm + eps) * g
    inv = pl.reciprocal(jnp.sqrt(ss) * inv_sqrt_d + eps, approx=True)        # EUP slot
    o_ref[...] = (h * inv * g_ref[...]).astype(o_ref.dtype)


def patch_embedding_forward(x, w, b, pos_embed, rms_weight, *, patch_size, eps=1e-6,
                            target_packed_rows=512):
    """x: (B, T, N, 2) float32. Returns (B, T, P, D) with P = ceil(N / patch_size)."""
    B, T, N, C = x.shape
    assert C == 2
    F_feat = patch_size * 2
    P = _ceil_div(N, patch_size)
    D = w.shape[1]
    assert 128 % D == 0, "lane-packing path assumes d_model divides 128"
    G = 128 // D                    # original rows packed per 128-lane output row
    DG = G * D                      # = 128 (lane-dense output width)
    FG = G * F_feat

    # --- glue: patch extraction + zero padding (matches the PyTorch loop + F.pad) ---
    # TODO(synk): for large N, fuse the pad / handle the ragged tail in-kernel instead
    # of materializing x_pad (negligible at pad_n <= patch_size-1 here).
    pad_n = P * patch_size - N
    x_pad = jnp.pad(x, ((0, 0), (0, 0), (0, pad_n), (0, 0)))
    rows = B * T * P
    flat = x_pad.reshape(rows, F_feat)                        # row r = (b*T + t)*P + p

    # --- row-tile choice: TM packed rows per grid step ---
    # TM must be a multiple of 8 (sublane) and of the pos-embed period in packed rows,
    # so every tile sees the same pos pattern and pos can be a constant block.
    period = math.lcm(P, G) // G
    tm_base = math.lcm(period, 8)
    rows_packed = _ceil_div(rows, G)
    TM = tm_base * max(1, _ceil_div(min(rows_packed, target_packed_rows), tm_base))
    grid_n = _ceil_div(rows_packed, TM)
    rows_pad = grid_n * TM * G

    flat = jnp.pad(flat, ((0, rows_pad - rows), (0, 0)))
    x_packed = flat.reshape(rows_pad // G, FG)                # (R_pack, G*F)

    # --- parameters rearranged for the packed (lane-dense) layout ---
    w_big = jnp.kron(jnp.eye(G, dtype=w.dtype), w)            # (G*F, G*D) block diagonal
    pos_pb = pos_embed.reshape(-1, D)[:P, :] + b.reshape(1, D)  # fold bias into pos
    pos_rows = pos_pb[jnp.arange(TM * G) % P]                 # (TM*G, D), period-aligned
    pos_tile = pos_rows.reshape(TM, DG)                       # (TM, G*D)
    g_big = jnp.tile(rms_weight.reshape(1, D), (1, G))        # (1, G*D)
    lane_seg = jnp.arange(DG) // D
    sqmask = (lane_seg[:, None] == lane_seg[None, :]).astype(jnp.float32)  # (G*D, G*D)

    kernel = functools.partial(_patch_embed_kernel, eps=eps, inv_sqrt_d=D ** -0.5)

    out = pl.pallas_call(
        kernel,
        out_shape=jax.ShapeDtypeStruct((rows_pad // G, DG), jnp.float32),
        grid_spec=pltpu.PrefetchScalarGridSpec(
            num_scalar_prefetch=0,
            grid=(grid_n,),
            in_specs=[
                pl.BlockSpec((TM, FG), lambda i: (i, 0)),     # packed patch rows
                pl.BlockSpec((FG, DG), lambda i: (0, 0)),     # block-diag weight
                pl.BlockSpec((TM, DG), lambda i: (0, 0)),     # pos + bias tile
                pl.BlockSpec((1, DG), lambda i: (0, 0)),      # RMSNorm weight
                pl.BlockSpec((DG, DG), lambda i: (0, 0)),     # segment mask
            ],
            out_specs=pl.BlockSpec((TM, DG), lambda i: (i, 0)),
        ),
        compiler_params=pltpu.CompilerParams(
            dimension_semantics=("parallel",),
        ),
    )(x_packed, w_big, pos_tile, g_big, sqmask)

    out = out.reshape(rows_pad, D)[:rows].reshape(B, T, P, D)
    return out


def patch_embedding_reference(x, w, b, pos_embed, rms_weight, *, patch_size, eps=1e-6):
    """Pure-JAX reference mirroring the PyTorch forward."""
    B, T, N, _ = x.shape
    P = _ceil_div(N, patch_size)
    pad_n = P * patch_size - N
    x_pad = jnp.pad(x, ((0, 0), (0, 0), (0, pad_n), (0, 0)))
    patches = x_pad.reshape(B, T, P, patch_size * 2)
    h = patches @ w + b
    h = h + pos_embed[:, :P, :][None]          # pos_embed is (1, max_P, D)
    d = h.shape[-1]
    norm = jnp.sqrt(jnp.sum(h * h, axis=-1, keepdims=True)) * (d ** -0.5)
    return h / (norm + eps) * rms_weight


if __name__ == "__main__":
    key = jax.random.PRNGKey(0)
    k_x, k_w, k_b, k_pos = jax.random.split(key, 4)

    # Module config: num_landmarks=10, d_model=32, patch_size=4 -> P = ceil(10/4) = 3
    num_landmarks = 10
    d_model = 32
    patch_size = 4
    B, T = 2, 3
    max_patches = (num_landmarks + patch_size - 1) // patch_size

    # deterministic "init" of parameters (synthetic, not a checkpoint)
    w = jax.random.normal(k_w, (patch_size * 2, d_model), jnp.float32) * 0.1
    b = jax.random.normal(k_b, (d_model,), jnp.float32) * 0.1
    pos_embed = jax.random.normal(k_pos, (1, max_patches, d_model), jnp.float32) * 0.02
    rms_weight = jnp.ones((d_model,), jnp.float32)

    x = jax.random.normal(k_x, (B, T, num_landmarks, 2), jnp.float32)

    out = patch_embedding_forward(
        x, w, b, pos_embed, rms_weight, patch_size=patch_size
    )
    out = jax.block_until_ready(out)

    ref = patch_embedding_reference(
        x, w, b, pos_embed, rms_weight, patch_size=patch_size
    )
    assert out.shape == (B, T, max_patches, d_model)
    # tolerance accounts for pl.reciprocal(approx=True) (~1e-3-level relative deviation)
    assert jnp.allclose(out, ref, atol=5e-3, rtol=5e-3), "mismatch vs reference"

    print("KERNEL_OK")
</pallas_src>

<mosaic_0001>
module attributes {stable_mosaic.version = 11 : i64} {
  func.func @_patch_embed_kernel(%arg0: i32, %arg1: memref<24x32xf32, #tpu.memory_space<vmem>>, %arg2: memref<32x128xf32, #tpu.memory_space<vmem>>, %arg3: memref<24x128xf32, #tpu.memory_space<vmem>>, %arg4: memref<1x128xf32, #tpu.memory_space<vmem>>, %arg5: memref<128x128xf32, #tpu.memory_space<vmem>>, %arg6: memref<24x128xf32, #tpu.memory_space<vmem>>) attributes {dimension_semantics = [#tpu.dimension_semantics<parallel>], iteration_bounds = array<i64: 1>, scalar_prefetch = 0 : i64, scratch_operands = 0 : i64, tpu.core_type = #tpu.core_type<tc>, window_params = [{transform_indices = @transform_0, window_bounds = array<i64: 24, 32>}, {pipeline_mode = #tpu.pipeline_mode<synchronous>, transform_indices = @transform_1, window_bounds = array<i64: 32, 128>}, {pipeline_mode = #tpu.pipeline_mode<synchronous>, transform_indices = @transform_2, window_bounds = array<i64: 24, 128>}, {pipeline_mode = #tpu.pipeline_mode<synchronous>, transform_indices = @transform_3, window_bounds = array<i64: 1, 128>}, {pipeline_mode = #tpu.pipeline_mode<synchronous>, transform_indices = @transform_4, window_bounds = array<i64: 128, 128>}, {transform_indices = @transform_5, window_bounds = array<i64: 24, 128>}]} {
    %c0 = arith.constant 0 : index
    %c0_0 = arith.constant 0 : index
    %0 = vector.load %arg1[%c0, %c0_0] : memref<24x32xf32, #tpu.memory_space<vmem>>, vector<24x32xf32>
    %c0_1 = arith.constant 0 : index
    %c0_2 = arith.constant 0 : index
    %1 = vector.load %arg2[%c0_1, %c0_2] : memref<32x128xf32, #tpu.memory_space<vmem>>, vector<32x128xf32>
    %cst = arith.constant dense<0.000000e+00> : vector<24x128xf32>
    %2 = tpu.matmul %0, %1, %cst {dimension_numbers = #tpu.dot_dimension_numbers<[1], [0], [0], [1], [0, 0, 1, 1], [], []>} : vector<24x32xf32>, vector<32x128xf32>, vector<24x128xf32> -> vector<24x128xf32>
    %c0_3 = arith.constant 0 : index
    %c0_4 = arith.constant 0 : index
    %3 = vector.load %arg3[%c0_3, %c0_4] : memref<24x128xf32, #tpu.memory_space<vmem>>, vector<24x128xf32>
    %4 = arith.addf %2, %3 : vector<24x128xf32>
    %5 = arith.mulf %4, %4 : vector<24x128xf32>
    %c0_5 = arith.constant 0 : index
    %c0_6 = arith.constant 0 : index
    %6 = vector.load %arg5[%c0_5, %c0_6] : memref<128x128xf32, #tpu.memory_space<vmem>>, vector<128x128xf32>
    %cst_7 = arith.constant dense<0.000000e+00> : vector<24x128xf32>
    %7 = tpu.matmul %5, %6, %cst_7 {dimension_numbers = #tpu.dot_dimension_numbers<[1], [0], [0], [1], [0, 0, 1, 1], [], []>} : vector<24x128xf32>, vector<128x128xf32>, vector<24x128xf32> -> vector<24x128xf32>
    %8 = math.sqrt %7 : vector<24x128xf32>
    %cst_8 = arith.constant 0.176776692 : f32
    %9 = vector.broadcast %cst_8 : f32 to vector<24x128xf32>
    %10 = arith.mulf %8, %9 : vector<24x128xf32>
    %cst_9 = arith.constant 9.99999997E-7 : f32
    %11 = vector.broadcast %cst_9 : f32 to vector<24x128xf32>
    %12 = arith.addf %10, %11 : vector<24x128xf32>
    %13 = tpu.reciprocal %12 {approx = true} : vector<24x128xf32> -> vector<24x128xf32>
    %14 = arith.mulf %4, %13 : vector<24x128xf32>
    %c0_10 = arith.constant 0 : index
    %c0_11 = arith.constant 0 : index
    %15 = vector.load %arg4[%c0_10, %c0_11] : memref<1x128xf32, #tpu.memory_space<vmem>>, vector<1x128xf32>
    %16 = vector.broadcast %15 : vector<1x128xf32> to vector<24x128xf32>
    %17 = arith.mulf %14, %16 : vector<24x128xf32>
    %c0_12 = arith.constant 0 : index
    %c0_13 = arith.constant 0 : index
    %18 = vector.load %arg6[%c0_12, %c0_13] : memref<24x128xf32, #tpu.memory_space<vmem>>, vector<24x128xf32>
    tpu.vector_store %arg6[%c0_12, %c0_13], %17 {strides = array<i32>} : memref<24x128xf32, #tpu.memory_space<vmem>>, vector<24x128xf32>,
    return
  }
  func.func @transform_0(%arg0: i32) -> (i32, i32) {
    %c0_i32 = arith.constant 0 : i32
    %c0_i32_0 = arith.constant 0 : i32
    return %arg0, %c0_i32 : i32, i32
  }
  func.func @transform_1(%arg0: i32) -> (i32, i32) {
    %c0_i32 = arith.constant 0 : i32
    %c0_i32_0 = arith.constant 0 : i32
    %c0_i32_1 = arith.constant 0 : i32
    return %c0_i32, %c0_i32_0 : i32, i32
  }
  func.func @transform_2(%arg0: i32) -> (i32, i32) {
    %c0_i32 = arith.constant 0 : i32
    %c0_i32_0 = arith.constant 0 : i32
    %c0_i32_1 = arith.constant 0 : i32
    return %c0_i32, %c0_i32_0 : i32, i32
  }
  func.func @transform_3(%arg0: i32) -> (i32, i32) {
    %c0_i32 = arith.constant 0 : i32
    %c0_i32_0 = arith.constant 0 : i32
    %c0_i32_1 = arith.constant 0 : i32
    return %c0_i32, %c0_i32_0 : i32, i32
  }
  func.func @transform_4(%arg0: i32) -> (i32, i32) {
    %c0_i32 = arith.constant 0 : i32
    %c0_i32_0 = arith.constant 0 : i32
    %c0_i32_1 = arith.constant 0 : i32
    return %c0_i32, %c0_i32_0 : i32, i32
  }
  func.func @transform_5(%arg0: i32) -> (i32, i32) {
    %c0_i32 = arith.constant 0 : i32
    %c0_i32_0 = arith.constant 0 : i32
    return %arg0, %c0_i32 : i32, i32
  }
}

</mosaic_0001>

<bundles_post_ra>
// kernel: tpu_custom_call.1
= control target key start
LH: loop header
LB: loop body
LE: loop exit
PB: predicated region body
PF: predicated region fallthrough
CT: control target
= control target key end

     0   :  { %10 = vsyncpa [#allocation3], 0  ;;  %s745_s0 = inlined_call_operand.hbm [shape: f32[24,32], index: 0, kind: input, shape index: {}]   ;;  %s746_s1 = inlined_call_operand.hbm [shape: f32[32,128], index: 1, kind: input, shape index: {}]   ;;  %s747_s2 = inlined_call_operand.hbm [shape: f32[24,128], index: 2, kind: input, shape index: {}]   ;;  %s748_s3 = inlined_call_operand.vmem [shape: f32[1,128], index: 3, kind: input, shape index: {}]   ;;  %s749_s4 = inlined_call_operand.hbm [shape: f32[128,128], index: 4, kind: input, shape index: {}]   ;;  %s750_s5 = inlined_call_operand.hbm [shape: f32[24,128], index: 5, kind: output, shape index: {}]  }
   0x1   :  { %11 = vsyncpa [#allocation6], 0 }
   0x2   :  { %12 = vsyncpa [#allocation9], 0 }
   0x3   :  { %13 = vsyncpa [#allocation4], 0  ;;  %s598_s18 = smov [#allocation5]   ;;  %s599_s20 = smov [#allocation2]  }
   0x4   :  { %s31_s19 = sshll.u32 %s598_s18, 4  ;;  %s19_s21 = sshll.u32 %s599_s20, 4  ;;  %s32_s19 = int_to_ptr.vmem [resolvable:$true] %s31_s19  ;;  %s638_s21 = int_to_ptr.vmem [resolvable:$true] %s19_s21 }
   0x5   :  { %s480_s24 = scalar_lea.hbm %s746_s1, 512 }
   0x6   :  { %p481_p0 = scmp.ne.s32.totalorder %s746_s1, %s480_s24  ;;  %p484_p1 = scmp.lt.u32.totalorder %s480_s24, %s746_s1 }
   0x8   :  { %p486_p2 = pnand %p484_p1, %p481_p0 }
   0xa   :  { %489 = shalt.err (!%p486_p2)
}
   0xb   :  { %s490_s29 = scalar_lea.vmem %s32_s19, 512  ;;  %p495_p4 = scmp.lt.s32.totalorder %s32_s19, %s32_s19 }
   0xc   :  { %p491_p3 = scmp.ne.s32.totalorder %s32_s19, %s490_s29  ;;  %p496_p5 = scmp.lt.s32.totalorder %s490_s29, %s490_s29 }
   0xe   :  { %p497_p6 = por %p496_p5, %p495_p4 }
  0x10   :  { %p498_p7 = pnand %p497_p6, %p491_p3 }
  0x12   :  { %501 = shalt.err (!%p498_p7)
}
  0x13   :  { %s600_s30 = smov 128   ;;  %s601_s6 = smov 8  }
  0x14   :  { %37 = dma.hbm_to_vmem [thread:$0]  %s746_s1, 512, %s32_s19, [#allocation6], %s600_s30, %s600_s30, %s601_s6  }
  0x15   :  { %s502_s11 = scalar_lea.hbm %s745_s0, 384 }
  0x16   :  { %p503_p8 = scmp.ne.s32.totalorder %s745_s0, %s502_s11  ;;  %p506_p9 = scmp.lt.u32.totalorder %s502_s11, %s745_s0 }
  0x18   :  { %p508_p10 = pnand %p506_p9, %p503_p8 }
  0x1a   :  { %511 = shalt.err (!%p508_p10)
}
  0x1b   :  { %s512_s16 = scalar_lea.vmem %s638_s21, 384  ;;  %p517_p12 = scmp.lt.s32.totalorder %s638_s21, %s638_s21 }
  0x1c   :  { %p513_p11 = scmp.ne.s32.totalorder %s638_s21, %s512_s16  ;;  %p518_p13 = scmp.lt.s32.totalorder %s512_s16, %s512_s16 }
  0x1e   :  { %p519_p0 = por %p518_p13, %p517_p12 }
  0x20   :  { %p520_p1 = pnand %p519_p0, %p513_p11 }
  0x22   :  { %523 = shalt.err (!%p520_p1)
}
  0x23   :  { %25 = dma.hbm_to_vmem [thread:$0]  %s745_s0, 384, %s638_s21, [#allocation3], %s600_s30, %s600_s30, %s601_s6  }
  0x24   :  { %s602_s18 = smov [#allocation7]   ;;  %s603_s20 = smov [#allocation8]  }
  0x25   :  { %s43_s19 = sshll.u32 %s602_s18, 4  ;;  %s57_s22 = sshll.u32 %s603_s20, 4  ;;  %s44_s19 = int_to_ptr.vmem [resolvable:$true] %s43_s19  ;;  %s675_s22 = int_to_ptr.vmem [resolvable:$true] %s57_s22 }
  0x26   :  { %s524_s25 = scalar_lea.hbm %s747_s2, 384 }
  0x27   :  { %p525_p2 = scmp.ne.s32.totalorder %s747_s2, %s524_s25  ;;  %p528_p3 = scmp.lt.u32.totalorder %s524_s25, %s747_s2 }
  0x29   :  { %p530_p4 = pnand %p528_p3, %p525_p2 }
  0x2b   :  { %533 = shalt.err (!%p530_p4)
}
  0x2c   :  { %s534_s0 = scalar_lea.vmem %s44_s19, 384  ;;  %p539_p6 = scmp.lt.s32.totalorder %s44_s19, %s44_s19 }
  0x2d   :  { %p535_p5 = scmp.ne.s32.totalorder %s44_s19, %s534_s0  ;;  %p540_p7 = scmp.lt.s32.totalorder %s534_s0, %s534_s0 }
  0x2f   :  { %p541_p8 = por %p540_p7, %p539_p6 }
  0x31   :  { %p542_p9 = pnand %p541_p8, %p535_p5 }
  0x33   :  { %545 = shalt.err (!%p542_p9)
}
  0x34   :  { %49 = dma.hbm_to_vmem [thread:$0]  %s747_s2, 384, %s44_s19, [#allocation6], %s600_s30, %s600_s30, %s601_s6  }
  0x35   :  { %s546_s10 = scalar_lea.hbm %s749_s4, 2048 }
  0x36   :  { %p547_p10 = scmp.ne.s32.totalorder %s749_s4, %s546_s10  ;;  %p550_p11 = scmp.lt.u32.totalorder %s546_s10, %s749_s4 }
  0x38   :  { %p552_p12 = pnand %p550_p11, %p547_p10 }
  0x3a   :  { %555 = shalt.err (!%p552_p12)
}
  0x3b   :  { %s556_s15 = scalar_lea.vmem %s675_s22, 2048  ;;  %p561_p0 = scmp.lt.s32.totalorder %s675_s22, %s675_s22 }
  0x3c   :  { %p557_p13 = scmp.ne.s32.totalorder %s675_s22, %s556_s15  ;;  %p562_p1 = scmp.lt.s32.totalorder %s556_s15, %s556_s15 }
  0x3e   :  { %p563_p2 = por %p562_p1, %p561_p0 }
  0x40   :  { %p564_p3 = pnand %p563_p2, %p557_p13 }
  0x42   :  { %567 = shalt.err (!%p564_p3)
}
  0x43   :  { %63 = dma.hbm_to_vmem [thread:$0]  %s749_s4, 2048, %s675_s22, [#allocation9], %s600_s30, %s600_s30, %s601_s6  }
  0x44   :  { %590 = dma.done.wait [#allocation3], 384  }
  0x45   :  { %591 = vsyncadd [#allocation3], 4294966912 }
  0x46   :  { %592 = dma.done.wait [#allocation6], 896  }
  0x47   :  { %593 = vsyncadd [#allocation6], 4294966400 }
  0x48   :  { %594 = dma.done.wait [#allocation9], 2048  }
  0x49   :  { %595 = vsyncadd [#allocation9], 4294965248  ;;  %v604_v0 = vmov 0.0|0.0   ;;  %vm605_vm0 = vmmov 0   ;;  %v606_v1 = vmov 0.0   ;;  %v79_v2 = vld [vmem:[#allocation5] sm:$0xff] }
  0x4a   :  { %428 = vmatprep.subr.bf16.mxu0 %v604_v0  ;;  %378 = vmatprep.mubr.msk.f32.mxu0 %vm605_vm0, %v606_v1  ;;  %v80_v3 = vld [vmem:[#allocation5 + $0x8] sm:$0xff]  ;;  %v81_v4 = vld [vmem:[#allocation5 + $0x10] sm:$0xff]  ;;  %v82_v6 = vld [vmem:[#allocation5 + $0x18] sm:$0xff]  ;;  %vm86_vm1 = vcmask 261120   ;;  %s607_s17 = smov [#allocation10]  }
  0x4b   :  { %434 = vmatprep.subr.bf16.mxu1 %v604_v0  ;;  %419 = vmatprep.mubr.msk.f32.mxu1 %vm605_vm0, %v606_v1  ;;  %v429_v5 = vpack.c.bf16 %v80_v3, %v79_v2  ;;  %v179_v7 = vld [vmem:[#allocation8] sm:$0xff]  ;;  %v180_v8 = vld [vmem:[#allocation8 + $0x8] sm:$0xff]  ;;  %v432_v9 = vpack.c.bf16 %v82_v6, %v81_v4  ;;  %v181_v11 = vld [vmem:[#allocation8 + $0x10] sm:$0xff]  ;;  %s326_s18 = sshll.u32 %s607_s17, 4  ;;  %s327_s18 = int_to_ptr.vmem [resolvable:$true] %s326_s18 }
  0x4c   :  { %v435_v10 = vpack.c.bf16 %v180_v8, %v179_v7  ;;  %v182_v12 = vld [vmem:[#allocation8 + $0x18] sm:$0xff]  ;;  %v183_v14 = vld [vmem:[#allocation8 + $0x20] sm:$0xff]  ;;  %v184_v15 = vld [vmem:[#allocation8 + $0x28] sm:$0xff]  ;;  %s568_s19 = scalar_lea.vmem %s327_s18, 384  ;;  %p573_p5 = scmp.lt.s32.totalorder %s327_s18, %s327_s18 }
  0x4d   :  { %430 = vmatpush3.bf16.msra.mxu0 %v429_v5  ;;  %v438_v13 = vpack.c.bf16 %v182_v12, %v181_v11  ;;  %v76_v16 = vld [vmem:[#allocation2] sm:$0xff]  ;;  %v441_v17 = vpack.c.bf16 %v184_v15, %v183_v14  ;;  %v186_v19 = vld [vmem:[#allocation8 + $0x38] sm:$0xff]  ;;  %v187_v22 = vld [vmem:[#allocation8 + $0x40] sm:$0xff]  ;;  %p569_p4 = scmp.ne.s32.totalorder %s327_s18, %s568_s19  ;;  %p574_p6 = scmp.lt.s32.totalorder %s568_s19, %s568_s19 }
  0x4e   :  { %431 = vmatprep.subr.bf16.mxu0 %v604_v0  ;;  %436 = vmatpush3.bf16.msra.mxu1 %v435_v10  ;;  %v185_v18 = vld [vmem:[#allocation8 + $0x30] sm:$0xff]  ;;  %v77_v20 = vld [vmem:[#allocation2 + $0x8] sm:$0xff]  ;;  %v188_v23 = vld [vmem:[#allocation8 + $0x48] sm:$0xff] }
  0x4f   :  { %437 = vmatprep.subr.bf16.mxu1 %v604_v0  ;;  %v444_v21 = vpack.c.bf16 %v186_v19, %v185_v18  ;;  %v78_v24 = vld [vmem:[#allocation2 + $0x10] sm:$0xff]  ;;  %v447_v25 = vpack.c.bf16 %v188_v23, %v187_v22  ;;  %v189_v26 = vld [vmem:[#allocation8 + $0x50] sm:$0xff]  ;;  %v190_v27 = vld [vmem:[#allocation8 + $0x58] sm:$0xff]  ;;  %p575_p7 = por %p574_p6, %p573_p5 }
  0x50   :  { %v450_v28 = vpack.c.bf16 %v190_v27, %v189_v26  ;;  %v191_v29 = vld [vmem:[#allocation8 + $0x60] sm:$0xff]  ;;  %v192_v30 = vld [vmem:[#allocation8 + $0x68] sm:$0xff]  ;;  %v193_v32 = vld [vmem:[#allocation8 + $0x70] sm:$0xff] }
  0x51   :  { %433 = vmatpush3.bf16.msra.mxu0 %v432_v9  ;;  %v453_v31 = vpack.c.bf16 %v192_v30, %v191_v29  ;;  %v194_v33 = vld [vmem:[#allocation8 + $0x78] sm:$0xff]  ;;  %v83_v35 = vld [vmem:[#allocation7] sm:$0xff]  ;;  %v84_v39 = vld [vmem:[#allocation7 + $0x8] sm:$0xff]  ;;  %p576_p8 = pnand %p575_p7, %p569_p4 }
  0x52   :  { %439 = vmatpush3.bf16.msra.mxu1 %v438_v13  ;;  %v456_v34 = vpack.c.bf16 %v194_v33, %v193_v32  ;;  %v85_v44 = vld [vmem:[#allocation7 + $0x10] sm:$0xff]  ;;  %v343_v14 = vld [vmem:[%s748_s3] ss:$0 sm:$0xff] }
  0x53   :  { %440 = vmatprep.subr.bf16.mxu1 %v604_v0 }
  0x54   :  { %379 = vmatmul.mubr.msk.f32.vlgmr.msra.gmra.mrb[0].mxu0 %vm86_vm1, %v76_v16 }
  0x55   :  { %381 = vmatprep.mubr.msk.f32.mxu0 %vm605_vm0, %v606_v1 }
  0x56   :  { %442 = vmatpush3.bf16.msra.mxu1 %v441_v17 }
  0x57   :  { %443 = vmatprep.subr.bf16.mxu1 %v604_v0 }
  0x58   :  { %382 = vmatmul.mubr.msk.f32.gmra.mrb[2].mxu0 %vm86_vm1, %v77_v20 }
  0x59   :  { %384 = vmatprep.mubr.msk.f32.mxu0 %vm605_vm0, %v606_v1 }
  0x5a   :  { %445 = vmatpush3.bf16.msra.mxu1 %v444_v21 }
  0x5b   :  { %446 = vmatprep.subr.bf16.mxu1 %v604_v0 }
  0x5c   :  { %385 = vmatmul.mubr.msk.f32.gmra.mrb[4].mxu0 %vm86_vm1, %v78_v24 }
  0x5e   :  { %448 = vmatpush3.bf16.msra.mxu1 %v447_v25 }
  0x5f   :  { %449 = vmatprep.subr.bf16.mxu1 %v604_v0 }
  0x62   :  { %451 = vmatpush3.bf16.msra.mxu1 %v450_v28 }
  0x63   :  { %452 = vmatprep.subr.bf16.mxu1 %v604_v0 }
  0x66   :  { %454 = vmatpush3.bf16.msra.mxu1 %v453_v31 }
  0x67   :  { %455 = vmatprep.subr.bf16.mxu1 %v604_v0 }
  0x6a   :  { %457 = vmatpush3.bf16.msra.mxu1 %v456_v34 }
 0x127   :  { %v162_v36 = vpop.f32.mrb[0].mxu0 }
 0x128   :  { %v163_v37 = vadd.f32 %v162_v36, %v83_v35  ;;  %v380_v38 = vpop.f32.mrb[1].mxu0 }
 0x12a   :  { %v176_v40 = vmul.f32 %v163_v37, %v163_v37 }
 0x12b   :  { %v167_v41 = vpop.f32.mrb[2].mxu0 }
 0x12c   :  { %v168_v42 = vadd.f32 %v167_v41, %v84_v39  ;;  %v383_v43 = vpop.f32.mrb[3].mxu0  ;;  %420 = vmatmul.mubr.f32.vlgmr.msra.gmra.mrb[0].mxu1 %v176_v40 }
 0x12d   :  { %422 = vmatprep.mubr.msk.f32.mxu1 %vm605_vm0, %v606_v1 }
 0x12e   :  { %v177_v45 = vmul.f32 %v168_v42, %v168_v42 }
 0x12f   :  { %v172_v46 = vpop.f32.mrb[4].mxu0 }
 0x130   :  { %v173_v47 = vadd.f32 %v172_v46, %v85_v44  ;;  %v386_v48 = vpop.f32.mrb[5].mxu0  ;;  %423 = vmatmul.mubr.f32.gmra.mrb[2].mxu1 %v177_v45 }
 0x131   :  { %425 = vmatprep.mubr.msk.f32.mxu1 %vm605_vm0, %v606_v1 }
 0x132   :  { %v178_v49 = vmul.f32 %v173_v47, %v173_v47 }
 0x134   :  { %426 = vmatmul.mubr.f32.gmra.mrb[4].mxu1 %v178_v49 }
 0x1ff   :  { %v261_v50 = vpop.f32.mrb[0].mxu1 }
 0x200   :  { %468 = vrsqrt.f32 %v261_v50  ;;  %v421_v51 = vpop.f32.mrb[1].mxu1  ;;  %vm277_vm2 = vcmp.eq.f32.partialorder %v261_v50, inf  ;;  %v280_v58 = vand.u32 2147483648, %v261_v50  ;;  %vm279_vm3 = vcmp.eq.f32.partialorder %v261_v50, 0.0 }
 0x203   :  { %v266_v52 = vpop.f32.mrb[2].mxu1 }
 0x204   :  { %470 = vrsqrt.f32 %v266_v52  ;;  %v424_v53 = vpop.f32.mrb[3].mxu1  ;;  %vm284_vm4 = vcmp.eq.f32.partialorder %v266_v52, inf  ;;  %v287_v0 = vand.u32 2147483648, %v266_v52  ;;  %vm286_vm5 = vcmp.eq.f32.partialorder %v266_v52, 0.0 }
 0x207   :  { %v271_v54 = vpop.f32.mrb[4].mxu1 }
 0x208   :  { %472 = vrsqrt.f32 %v271_v54  ;;  %v427_v55 = vpop.f32.mrb[5].mxu1  ;;  %vm291_vm6 = vcmp.eq.f32.partialorder %v271_v54, inf  ;;  %v294_v7 = vand.u32 2147483648, %v271_v54  ;;  %vm293_vm7 = vcmp.eq.f32.partialorder %v271_v54, 0.0 }
 0x20a   :  { %v469_v56 = vpop.eup %468 }
 0x20b   :  { %v276_v57 = vmul.f32 %v469_v56, %v261_v50 }
 0x20d   :  { %v278_v59 = vsel %vm277_vm2, %v261_v50, %v276_v57 }
 0x20e   :  { %v471_v60 = vpop.eup %470  ;;  %v281_v61 = vsel %vm279_vm3, %v280_v58, %v278_v59 }
 0x20f   :  { %v296_v62 = vmul.f32 0.17677669, %v281_v61  ;;  %v283_v63 = vmul.f32 %v471_v60, %v266_v52 }
 0x211   :  { %v299_v1 = vadd.f32 1e-06, %v296_v62  ;;  %v285_v2 = vsel %vm284_vm4, %v266_v52, %v283_v63 }
 0x212   :  { %v473_v3 = vpop.eup %472  ;;  %v288_v4 = vsel %vm286_vm5, %v287_v0, %v285_v2 }
 0x213   :  { %474 = vrcp.f32 %v299_v1  ;;  %v297_v5 = vmul.f32 0.17677669, %v288_v4  ;;  %v290_v6 = vmul.f32 %v473_v3, %v271_v54 }
 0x215   :  { %v300_v8 = vadd.f32 1e-06, %v297_v5  ;;  %v292_v9 = vsel %vm291_vm6, %v271_v54, %v290_v6 }
 0x216   :  { %v295_v10 = vsel %vm293_vm7, %v294_v7, %v292_v9 }
 0x217   :  { %476 = vrcp.f32 %v300_v8  ;;  %v298_v11 = vmul.f32 0.17677669, %v295_v10 }
 0x219   :  { %v301_v12 = vadd.f32 1e-06, %v298_v11 }
 0x21b   :  { %478 = vrcp.f32 %v301_v12 }
 0x21d   :  { %v475_v13 = vpop.eup %474 }
 0x21e   :  { %v305_v15 = vmul.f32 %v475_v13, %v163_v37 }
 0x220   :  { %v315_v16 = vmul.f32 %v343_v14, %v305_v15 }
 0x221   :  { %v477_v17 = vpop.eup %476 }
 0x222   :  { %v306_v18 = vmul.f32 %v477_v17, %v168_v42  ;;  %318 = vst [vmem:[#allocation10] sm:$0xff] %v315_v16 }
 0x224   :  { %v316_v19 = vmul.f32 %v343_v14, %v306_v18 }
 0x225   :  { %v479_v20 = vpop.eup %478 }
 0x226   :  { %v307_v21 = vmul.f32 %v479_v20, %v173_v47  ;;  %319 = vst [vmem:[#allocation10 + $0x8] sm:$0xff] %v316_v19 }
 0x228   :  { %v317_v22 = vmul.f32 %v343_v14, %v307_v21 }
 0x22a   :  { %320 = vst [vmem:[#allocation10 + $0x10] sm:$0xff] %v317_v22 }
 0x22b   :  { %579 = shalt.err (!%p576_p8)
}
 0x22c   :  { %s580_s22 = scalar_lea.hbm %s750_s5, 384 }
 0x22d   :  { %p581_p9 = scmp.ne.s32.totalorder %s750_s5, %s580_s22  ;;  %p584_p10 = scmp.lt.u32.totalorder %s580_s22, %s750_s5 }
 0x22f   :  { %p586_p11 = pnand %p584_p10, %p581_p9 }
 0x231   :  { %589 = shalt.err (!%p586_p11)
}
 0x232   :  { %332 = dma.vmem_to_hbm [thread:$0]  %s327_s18, 384, %s750_s5, [#allocation4], %s600_s30, %s600_s30, %s601_s6  }
 0x233   :  { %596 = dma.done.wait [#allocation4], 384  }
 0x234   :  { %597 = vsyncadd [#allocation4], 4294966912 }
 0x235   :  { %336 = vsyncpa [#allocation3], 1 }
 0x236   :  { %337 = vsyncpa [#allocation6], 1 }
 0x237   :  { %338 = vsyncpa [#allocation9], 1 }
 0x238   :  { %339 = vsyncpa [#allocation4], 1 }

</bundles_post_ra>
